<compile_context>
chip_gen: v7x
topology: tpu7x:2x2x1
jax: 0.10.0
libtpu: 0.0.40
codegen_flags: <defaults>
</compile_context>

<pallas_src>
import jax
import jax.numpy as jnp
from jax.experimental import pallas as pl
from jax.experimental.pallas import tpu as pltpu


def _passthrough_kernel(img_hbm, txt_hbm, img_out_hbm, txt_out_hbm,
                        img_sem, txt_sem):
    """Whole-array HBM->HBM copies; no VMEM staging, no vld/vst loop."""
    img_cp = pltpu.make_async_copy(img_hbm, img_out_hbm, img_sem)
    txt_cp = pltpu.make_async_copy(txt_hbm, txt_out_hbm, txt_sem)
    # Issue both DMAs so they overlap, then wait on both.
    img_cp.start()
    txt_cp.start()
    img_cp.wait()
    txt_cp.wait()


@jax.jit
def _task_head_forward(images, texts):
    """Parameter-free pass-through: one fused pallas_call, two HBM->HBM DMAs."""
    return pl.pallas_call(
        _passthrough_kernel,
        out_shape=(
            jax.ShapeDtypeStruct(images.shape, images.dtype),
            jax.ShapeDtypeStruct(texts.shape, texts.dtype),
        ),
        # Raw refs, left where XLA placed them (HBM for activations); the
        # kernel moves data with explicit DMAs instead of BlockSpec tiling,
        # so no padding / (8,128) blocking / lane-width plumbing is needed.
        in_specs=[
            pl.BlockSpec(memory_space=pl.ANY),
            pl.BlockSpec(memory_space=pl.ANY),
        ],
        out_specs=(
            pl.BlockSpec(memory_space=pl.ANY),
            pl.BlockSpec(memory_space=pl.ANY),
        ),
        scratch_shapes=[
            pltpu.SemaphoreType.DMA(()),  # images copy completion
            pltpu.SemaphoreType.DMA(()),  # texts  copy completion
        ],
    )(images, texts)


class TaskHeadPallas:
    """Parameter-free stand-in for the abstract torch TaskHead."""

    def __init__(self):
        # torch.nn.Module.__init__(self) creates no parameters -> nothing here.
        pass

    def forward(self, images, texts):
        # images: (B, C, H, W) NCHW ; texts: (B, S, D)
        return _task_head_forward(images, texts)

    def compute_loss(self, source, target=None, labels=None):
        # TODO(synk): abstract in the reference module; no loss defined.
        raise NotImplementedError("TaskHead.compute_loss is abstract.")


if __name__ == "__main__":
    key = jax.random.PRNGKey(0)
    k_img, k_txt = jax.random.split(key)

    # Small shapes consistent with an (images, texts) head.
    images = jax.random.normal(k_img, (2, 4, 16, 16), dtype=jnp.float32)  # NCHW
    texts = jax.random.normal(k_txt, (2, 8, 32), dtype=jnp.float32)       # (B, S, D)

    head = TaskHeadPallas()
    img_out, txt_out = head.forward(images, texts)
    jax.block_until_ready((img_out, txt_out))

    # Pass-through correctness check.
    assert img_out.shape == images.shape and txt_out.shape == texts.shape
    assert img_out.dtype == images.dtype and txt_out.dtype == texts.dtype
    assert jnp.allclose(img_out, images)
    assert jnp.allclose(txt_out, texts)

    print("KERNEL_OK")
</pallas_src>

<mosaic_0001>
module attributes {stable_mosaic.version = 11 : i64} {
  func.func @_passthrough_kernel(%arg0: memref<2x4x16x16xf32, #tpu.memory_space<any>>, %arg1: memref<2x8x32xf32, #tpu.memory_space<any>>, %arg2: memref<2x4x16x16xf32, #tpu.memory_space<any>>, %arg3: memref<2x8x32xf32, #tpu.memory_space<any>>, %arg4: memref<!tpu.dma_semaphore, #tpu.memory_space<semaphore_mem>>, %arg5: memref<!tpu.dma_semaphore, #tpu.memory_space<semaphore_mem>>) attributes {dimension_semantics = [], scalar_prefetch = 0 : i64, scratch_operands = 2 : i64, tpu.core_type = #tpu.core_type<tc>} {
    tpu.enqueue_dma source(%arg0 : memref<2x4x16x16xf32, #tpu.memory_space<any>>) target(%arg2 : memref<2x4x16x16xf32, #tpu.memory_space<any>>) target_semaphore(%arg4 : memref<!tpu.dma_semaphore, #tpu.memory_space<semaphore_mem>>)
    tpu.enqueue_dma source(%arg1 : memref<2x8x32xf32, #tpu.memory_space<any>>) target(%arg3 : memref<2x8x32xf32, #tpu.memory_space<any>>) target_semaphore(%arg5 : memref<!tpu.dma_semaphore, #tpu.memory_space<semaphore_mem>>)
    tpu.wait_dma2 semaphore(%arg4 : memref<!tpu.dma_semaphore, #tpu.memory_space<semaphore_mem>>) src(%arg0 : memref<2x4x16x16xf32, #tpu.memory_space<any>>) dst(%arg2 : memref<2x4x16x16xf32, #tpu.memory_space<any>>)
    tpu.wait_dma2 semaphore(%arg5 : memref<!tpu.dma_semaphore, #tpu.memory_space<semaphore_mem>>) src(%arg1 : memref<2x8x32xf32, #tpu.memory_space<any>>) dst(%arg3 : memref<2x8x32xf32, #tpu.memory_space<any>>)
    return
  }
}

</mosaic_0001>

<bundles_post_ra>
// kernel: _task_head_forward.1
= control target key start
LH: loop header
LB: loop body
LE: loop exit
PB: predicated region body
PF: predicated region fallthrough
CT: control target
= control target key end

     0   :  { %s67_s12 = smov [#allocation2]   ;;  %s68_s13 = smov [#allocation4]   ;;  %s104_s0 = inlined_call_operand.hbm [shape: f32[2,4,16,16], index: 0, kind: input, shape index: {}]   ;;  %s105_s2 = inlined_call_operand.hbm [shape: f32[2,4,16,16], index: 2, kind: output, shape index: {0}]   ;;  %s106_s1 = inlined_call_operand.hbm [shape: f32[2,8,32], index: 1, kind: input, shape index: {}]   ;;  %s107_s3 = inlined_call_operand.hbm [shape: f32[2,8,32], index: 3, kind: output, shape index: {1}]  }
   0x1   :  { %s69_s14 = smov 0   ;;  %s70_s19 = smov [#allocation3]  }
   0x2   :  { %21 = dma.general %s104_s0, 2048, %s105_s2, %s67_s12, %s68_s13, [#allocation5], %s69_s14, 0  }
   0x3   :  { %s71_s20 = smov [#allocation6]  }
   0x4   :  { %34 = dma.general %s106_s1, 256, %s107_s3, %s70_s19, %s71_s20, [#allocation7], %s69_s14, 0  }
   0x5   :  { %63 = dma.done.wait [#allocation2], 2048 }
   0x6   :  { %64 = vsyncadd [#allocation2], 4294965248 }
   0x7   :  { %65 = dma.done.wait [#allocation3], 256 }
   0x8   :  { %66 = vsyncadd [#allocation3], 4294967040 }
   0x9   :  { %44 = vsyncmov [#allocation2] }
   0xc   :  { %s45_s25 = vpop.sfrf %44 }
   0xd   :  { %p56_p0 = scmp.ne.s32.totalorder %s45_s25, 0 }
   0xf   :  { %49 = shalt.err (%p56_p0)  }
  0x10   :  { %50 = vsyncmov [#allocation3] }
  0x13   :  { %s51_s26 = vpop.sfrf %50 }
  0x14   :  { %p57_p1 = scmp.ne.s32.totalorder %s51_s26, 0 }
  0x16   :  { %55 = shalt.err (%p57_p1)  }

</bundles_post_ra>
